<compile_context>
chip_gen: v6e
topology: v6e:2x2x1
jax: 0.10.0
libtpu: 0.0.40
codegen_flags: <defaults>
</compile_context>

<pallas_src>
import functools

import jax
import jax.numpy as jnp
from jax.experimental import pallas as pl
from jax.experimental.pallas import tpu as pltpu


def _round_up(x, m):
    return ((x + m - 1) // m) * m


def _choose_lane_tiles(N, tn_default):
    """Pick a lane (last-dim) tile: multiple of 128, prefer >=2 blocks (v7x)."""
    n_rounded = _round_up(N, 128)
    tn = min(tn_default, n_rounded)
    tn = max(128, (tn // 128) * 128)
    if n_rounded >= 256 and n_rounded // tn < 2:
        tn = max(128, ((n_rounded // 2) // 128) * 128)
    Np = _round_up(N, tn)
    return tn, Np


# --------------------------------------------------------------------------
# Pallas kernel 1: conv GEMM  (Cout, K) @ (K, B*Ho*Wo)  + bias + ReLU epilogue
# --------------------------------------------------------------------------
def _conv_gemm_kernel(w_ref, x_ref, b_ref, o_ref, acc_ref):
    @pl.when(pl.program_id(2) == 0)
    def _():
        acc_ref[...] = jnp.zeros_like(acc_ref)

    acc_ref[...] += jnp.dot(w_ref[...], x_ref[...],
                            preferred_element_type=jnp.float32)

    @pl.when(pl.program_id(2) == pl.num_programs(2) - 1)
    def _():
        # bias is per-Cout = per-row -> (tm, 1) broadcast over lanes
        o_ref[...] = jnp.maximum(acc_ref[...] + b_ref[...], 0.0).astype(o_ref.dtype)


def conv_gemm_bias_relu(w, x, b, *, tm=512, tn=512, tk=1024,
                        out_dtype=jnp.bfloat16):
    """relu(w @ x + b).  w:(M=Cout, K)  x:(K, N=B*Ho*Wo)  b:(M, 1)."""
    M, K = w.shape
    K2, N = x.shape
    assert K2 == K and b.shape == (M, 1)

    tm = min(tm, _round_up(M, 8))
    Mp = _round_up(M, tm)
    tn, Np = _choose_lane_tiles(N, tn)
    if K <= tk:                      # small K: single step, full-dim block (no pad)
        tk, Kp = K, K
    else:                            # tk stays a multiple of 128
        Kp = _round_up(K, tk)

    wp = jnp.pad(w, ((0, Mp - M), (0, Kp - K))).astype(jnp.bfloat16)
    xp = jnp.pad(x, ((0, Kp - K), (0, Np - N))).astype(jnp.bfloat16)
    bp = jnp.pad(b, ((0, Mp - M), (0, 0))).astype(jnp.float32)

    out = pl.pallas_call(
        _conv_gemm_kernel,
        out_shape=jax.ShapeDtypeStruct((Mp, Np), out_dtype),
        grid_spec=pltpu.PrefetchScalarGridSpec(
            num_scalar_prefetch=0,
            grid=(Mp // tm, Np // tn, Kp // tk),
            in_specs=[
                pl.BlockSpec((tm, tk), lambda i, j, k: (i, k)),
                pl.BlockSpec((tk, tn), lambda i, j, k: (k, j)),
                pl.BlockSpec((tm, 1), lambda i, j, k: (i, 0)),
            ],
            out_specs=pl.BlockSpec((tm, tn), lambda i, j, k: (i, j)),
            scratch_shapes=[pltpu.VMEM((tm, tn), jnp.float32)],
        ),
        compiler_params=pltpu.CompilerParams(
            dimension_semantics=("parallel", "parallel", "arbitrary")),
    )(wp, xp, bp)
    # Slice is a no-op when M, N are already tile-aligned (the common case here).
    return out[:M, :N]


# --------------------------------------------------------------------------
# Pallas kernel 2: sublane-dense max over pooling windows
# --------------------------------------------------------------------------
def _pool_max_kernel(x_ref, o_ref):
    # x: (KK, tr, 128) -> o: (tr, 128); elementwise max over the window axis.
    o_ref[...] = jnp.max(x_ref[...], axis=0)


def max_over_windows_flat(stacked, *, max_rows=256):
    """stacked: (KK, P) -> (P,) max over axis 0, (rows, 128) sublane-dense blocks."""
    KK, P = stacked.shape
    LANES = 128
    rows = (P + LANES - 1) // LANES
    tr = min(_round_up(rows, 8), max_rows)
    rows_p = _round_up(rows, tr)
    Pp = rows_p * LANES
    pad_val = float(jnp.finfo(stacked.dtype).min)   # padded cols sliced off below
    xs = jnp.pad(stacked, ((0, 0), (0, Pp - P)), constant_values=pad_val)
    xs = xs.reshape(KK, rows_p, LANES)
    out = pl.pallas_call(
        _pool_max_kernel,
        out_shape=jax.ShapeDtypeStruct((rows_p, LANES), stacked.dtype),
        grid=(rows_p // tr,),
        in_specs=[pl.BlockSpec((KK, tr, LANES), lambda i: (0, i, 0))],
        out_specs=pl.BlockSpec((tr, LANES), lambda i: (i, 0)),
        compiler_params=pltpu.CompilerParams(
            dimension_semantics=("parallel",)),
    )(xs)
    return out.reshape(-1)[:P]


# --------------------------------------------------------------------------
# Pallas kernel 3: fused tiny MLP  (Linear -> ReLU)*  in one pallas_call
# --------------------------------------------------------------------------
def _mlp_fused_kernel(*refs, n_layers):
    x_ref, o_ref = refs[0], refs[-1]
    h = x_ref[...]
    for l in range(n_layers):
        w = refs[1 + 2 * l][...]
        b = refs[2 + 2 * l][...]
        h = jnp.dot(h.astype(w.dtype), w, preferred_element_type=jnp.float32)
        # Per the reference module the FINAL Linear is also followed by ReLU.
        h = jnp.maximum(h + b, 0.0)
    o_ref[...] = h.astype(o_ref.dtype)


def mlp_fused(x, layers, *, out_dtype=jnp.float32):
    """layers: list of (w:(K,N) bf16, b:(1,N) f32). Everything fits in VMEM."""
    args = [x]
    for w, b in layers:
        args += [w, b]
    n_out = layers[-1][0].shape[1]
    kernel = functools.partial(_mlp_fused_kernel, n_layers=len(layers))
    return pl.pallas_call(
        kernel,
        out_shape=jax.ShapeDtypeStruct((x.shape[0], n_out), out_dtype),
    )(*args)


# --------------------------------------------------------------------------
# Layer wrappers (channels-first (C, B, H, W) throughout the conv stack)
# --------------------------------------------------------------------------
def conv2d_relu_cfirst(x, w_mat, b_col, ksize, stride, padding):
    """Conv2d + ReLU. x:(Cin,B,H,W), w_mat:(Cout,K*K*Cin), b_col:(Cout,1)."""
    Cin, B, H, W = x.shape
    Cout = w_mat.shape[0]
    Ho = (H - ksize + 2 * padding) // stride + 1
    Wo = (W - ksize + 2 * padding) // stride + 1
    xp = jnp.pad(x, ((0, 0), (0, 0), (padding, padding), (padding, padding)))
    cols = []
    for kh in range(ksize):
        for kw in range(ksize):
            cols.append(jax.lax.slice(
                xp, (0, 0, kh, kw),
                (Cin, B, kh + (Ho - 1) * stride + 1, kw + (Wo - 1) * stride + 1),
                (1, 1, stride, stride)))
    # (KK, Cin, B, Ho, Wo) -> (KK*Cin, B*Ho*Wo); contiguous, no transposes.
    patches = jnp.stack(cols, axis=0).reshape(ksize * ksize * Cin, B * Ho * Wo)
    y = conv_gemm_bias_relu(w_mat, patches, b_col)          # (Cout, B*Ho*Wo) bf16
    return y.reshape(Cout, B, Ho, Wo)


def maxpool2d_cfirst(x, mk, ms, mp):
    """MaxPool2d. x:(C,B,H,W)."""
    C, B, H, W = x.shape
    Hp = (H - mk + 2 * mp) // ms + 1
    Wp = (W - mk + 2 * mp) // ms + 1
    if mp > 0:
        x = jnp.pad(x, ((0, 0), (0, 0), (mp, mp), (mp, mp)),
                    constant_values=-jnp.inf)
    wins = []
    for kh in range(mk):
        for kw in range(mk):
            wins.append(jax.lax.slice(
                x, (0, 0, kh, kw),
                (C, B, kh + (Hp - 1) * ms + 1, kw + (Wp - 1) * ms + 1),
                (1, 1, ms, ms)))
    stacked = jnp.stack(wins, axis=0).reshape(mk * mk, C * B * Hp * Wp)
    pooled = max_over_windows_flat(stacked)
    return pooled.reshape(C, B, Hp, Wp)


# --------------------------------------------------------------------------
# ConvolutionalNN: deterministic init with pre-packed weights + forward
# --------------------------------------------------------------------------
def init_params(key, input_size, conv_layers, flat_layers, n_output):
    """Mirrors ConvolutionalNN.__init__ shape logic; weights pre-packed once."""
    H, W, in_ch = int(input_size[0]), int(input_size[1]), int(input_size[2])
    d = [H, W]
    conv_params = []
    for (out_ch, k, s, p, mk, ms, mp) in conv_layers:
        key, k1, k2 = jax.random.split(key, 3)
        w = jax.random.normal(k1, (out_ch, in_ch, k, k), jnp.float32) * 0.1
        b = jax.random.normal(k2, (out_ch,), jnp.float32) * 0.1
        # Pre-pack: (Cout,Cin,K,K) -> (Cout,K,K,Cin) -> (Cout,K*K*Cin) bf16
        w_mat = w.transpose(0, 2, 3, 1).reshape(out_ch, k * k * in_ch)
        conv_params.append(dict(
            w=w_mat.astype(jnp.bfloat16),
            b=b.reshape(out_ch, 1).astype(jnp.float32),
            ksize=k, stride=s, pad=p, pool_k=mk, pool_s=ms, pool_p=mp))
        d[0] = (d[0] - k + 2 * p) // s + 1
        d[1] = (d[1] - k + 2 * p) // s + 1
        d[0] = (d[0] - mk + 2 * mp) // ms + 1
        d[1] = (d[1] - mk + 2 * mp) // ms + 1
        in_ch = out_ch
    n_in = d[0] * d[1] * in_ch
    mlp_params = []
    for n_out in list(flat_layers) + [n_output]:
        key, k1, k2 = jax.random.split(key, 3)
        w = jax.random.normal(k1, (n_out, n_in), jnp.float32) * 0.1  # nn.Linear (out,in)
        b = jax.random.normal(k2, (n_out,), jnp.float32) * 0.1
        # Pre-pack: (out,in) -> (in,out) bf16, bias (1,out) f32
        mlp_params.append((w.T.astype(jnp.bfloat16),
                           b.reshape(1, n_out).astype(jnp.float32)))
        n_in = n_out
    return {"conv": conv_params, "mlp": mlp_params}


def convolutional_nn_forward(params, x):
    """Forward: [Conv2d, ReLU, MaxPool2d]*, Flatten, [Linear, ReLU]*, Linear, ReLU.

    x is NCHW (like PyTorch).  bf16 MXU inputs / bf16 intermediate activations,
    f32 accumulation; final output f32."""
    x = jnp.transpose(x, (1, 0, 2, 3)).astype(jnp.bfloat16)   # NCHW -> (C,B,H,W)
    for lp in params["conv"]:
        x = conv2d_relu_cfirst(x, lp["w"], lp["b"], lp["ksize"], lp["stride"], lp["pad"])
        x = maxpool2d_cfirst(x, lp["pool_k"], lp["pool_s"], lp["pool_p"])
    C, B, Hp, Wp = x.shape
    # nn.Flatten on NCHW -> (B, C*H*W) in (c,h,w) order: one transpose, once.
    x = jnp.transpose(x, (1, 0, 2, 3)).reshape(B, C * Hp * Wp)
    return mlp_fused(x, params["mlp"], out_dtype=jnp.float32)


# TODO(synk): init_weights / get_features are training-time / introspection
# utilities, not part of the forward pass; not implemented here.


# --------------------------------------------------------------------------
# Pure-JAX f32 reference (same bf16-rounded weights) for a loose sanity check.
# --------------------------------------------------------------------------
def reference_forward(params, x):
    x = x.astype(jnp.float32)
    for lp in params["conv"]:
        cout = lp["w"].shape[0]
        k = lp["ksize"]
        cin = lp["w"].shape[1] // (k * k)
        w = (lp["w"].astype(jnp.float32)
             .reshape(cout, k, k, cin).transpose(0, 3, 1, 2))        # (O,I,K,K)
        b = lp["b"].astype(jnp.float32).reshape(1, cout, 1, 1)
        x = jax.lax.conv_general_dilated(
            x, w, window_strides=(lp["stride"], lp["stride"]),
            padding=[(lp["pad"], lp["pad"])] * 2,
            dimension_numbers=("NCHW", "OIHW", "NCHW"))
        x = jnp.maximum(x + b, 0.0)
        mk, ms, mp = lp["pool_k"], lp["pool_s"], lp["pool_p"]
        x = jax.lax.reduce_window(
            x, -jnp.inf, jax.lax.max,
            (1, 1, mk, mk), (1, 1, ms, ms),
            [(0, 0), (0, 0), (mp, mp), (mp, mp)])
    x = x.reshape(x.shape[0], -1)
    for w, b in params["mlp"]:
        x = jnp.maximum(x @ w.astype(jnp.float32) + b, 0.0)
    return x


if __name__ == "__main__":
    # Small config consistent with the module's __init__:
    # 16x16x4 input, two conv stages, one hidden dense layer, 4 outputs, ReLU.
    input_size = [16, 16, 4]                                   # [H, W, Nchannel]
    conv_layers = [
        # (out_ch, kernel, stride, pad, pool_k, pool_s, pool_pad)
        (8, 3, 1, 1, 2, 2, 0),
        (16, 3, 1, 1, 2, 2, 0),
    ]
    flat_layers = [32]
    n_output = 4

    key = jax.random.PRNGKey(0)
    key, xkey = jax.random.split(key)
    x = jax.random.normal(xkey, (2, 4, 16, 16), jnp.float32)   # NCHW, batch=2

    params = init_params(key, input_size, conv_layers, flat_layers, n_output)
    fwd = jax.jit(lambda inp: convolutional_nn_forward(params, inp))
    out = jax.block_until_ready(fwd(x))
    assert out.shape == (2, 4), out.shape

    ref = jax.block_until_ready(reference_forward(params, x))
    max_err = float(jnp.max(jnp.abs(out - ref)))
    # bf16 MXU inputs / bf16 activations vs f32 reference: loose tolerance.
    assert max_err < 0.15, f"max abs error vs f32 reference: {max_err}"
    print("KERNEL_OK")
</pallas_src>

<mosaic_0001>
module attributes {stable_mosaic.version = 11 : i64} {
  func.func @_conv_gemm_kernel(%arg0: i32, %arg1: i32, %arg2: i32, %arg3: memref<8x36xbf16, #tpu.memory_space<vmem>>, %arg4: memref<36x256xbf16, #tpu.memory_space<vmem>>, %arg5: memref<8x1xf32, #tpu.memory_space<vmem>>, %arg6: memref<8x256xbf16, #tpu.memory_space<vmem>>, %arg7: memref<8x256xf32, #tpu.memory_space<vmem>>) attributes {dimension_semantics = [#tpu.dimension_semantics<parallel>, #tpu.dimension_semantics<parallel>, #tpu.dimension_semantics<arbitrary>], iteration_bounds = array<i64: 1, 2, 1>, scalar_prefetch = 0 : i64, scratch_operands = 1 : i64, tpu.core_type = #tpu.core_type<tc>, window_params = [{transform_indices = @transform_0, window_bounds = array<i64: 8, 36>}, {transform_indices = @transform_1, window_bounds = array<i64: 36, 256>}, {transform_indices = @transform_2, window_bounds = array<i64: 8, 1>}, {transform_indices = @transform_3, window_bounds = array<i64: 8, 256>}]} {
    %c0_i32 = arith.constant 0 : i32
    %0 = arith.cmpi eq, %arg2, %c0_i32 : i32
    %1 = arith.extui %0 : i1 to i32
    %c0_i32_0 = arith.constant 0 : i32
    %2 = arith.cmpi ne, %1, %c0_i32_0 : i32
    scf.if %2 {
      %cst_10 = arith.constant 0.000000e+00 : f32
      %12 = vector.broadcast %cst_10 : f32 to vector<8x256xf32>
      %c0_11 = arith.constant 0 : index
      %c0_12 = arith.constant 0 : index
      %13 = vector.load %arg7[%c0_11, %c0_12] : memref<8x256xf32, #tpu.memory_space<vmem>>, vector<8x256xf32>
      tpu.vector_store %arg7[%c0_11, %c0_12], %12 {strides = array<i32>} : memref<8x256xf32, #tpu.memory_space<vmem>>, vector<8x256xf32>,
    } else {
    }
    %c0 = arith.constant 0 : index
    %c0_1 = arith.constant 0 : index
    %3 = vector.load %arg7[%c0, %c0_1] : memref<8x256xf32, #tpu.memory_space<vmem>>, vector<8x256xf32>
    %c0_2 = arith.constant 0 : index
    %c0_3 = arith.constant 0 : index
    %4 = vector.load %arg3[%c0_2, %c0_3] : memref<8x36xbf16, #tpu.memory_space<vmem>>, vector<8x36xbf16>
    %c0_4 = arith.constant 0 : index
    %c0_5 = arith.constant 0 : index
    %5 = vector.load %arg4[%c0_4, %c0_5] : memref<36x256xbf16, #tpu.memory_space<vmem>>, vector<36x256xbf16>
    %cst = arith.constant dense<0.000000e+00> : vector<8x256xf32>
    %6 = tpu.matmul %4, %5, %cst {dimension_numbers = #tpu.dot_dimension_numbers<[1], [0], [0], [1], [0, 0, 1, 1], [], []>} : vector<8x36xbf16>, vector<36x256xbf16>, vector<8x256xf32> -> vector<8x256xf32>
    %7 = arith.addf %3, %6 : vector<8x256xf32>
    %c0_6 = arith.constant 0 : index
    %c0_7 = arith.constant 0 : index
    %8 = vector.load %arg7[%c0_6, %c0_7] : memref<8x256xf32, #tpu.memory_space<vmem>>, vector<8x256xf32>
    tpu.vector_store %arg7[%c0_6, %c0_7], %7 {strides = array<i32>} : memref<8x256xf32, #tpu.memory_space<vmem>>, vector<8x256xf32>,
    %c0_i32_8 = arith.constant 0 : i32
    %9 = arith.cmpi eq, %arg2, %c0_i32_8 : i32
    %10 = arith.extui %9 : i1 to i32
    %c0_i32_9 = arith.constant 0 : i32
    %11 = arith.cmpi ne, %10, %c0_i32_9 : i32
    scf.if %11 {
      %c0_10 = arith.constant 0 : index
      %c0_11 = arith.constant 0 : index
      %12 = vector.load %arg7[%c0_10, %c0_11] : memref<8x256xf32, #tpu.memory_space<vmem>>, vector<8x256xf32>
      %c0_12 = arith.constant 0 : index
      %c0_13 = arith.constant 0 : index
      %13 = vector.load %arg5[%c0_12, %c0_13] : memref<8x1xf32, #tpu.memory_space<vmem>>, vector<8x1xf32>
      %14 = vector.broadcast %13 : vector<8x1xf32> to vector<8x256xf32>
      %15 = arith.addf %12, %14 : vector<8x256xf32>
      %cst_14 = arith.constant 0.000000e+00 : f32
      %16 = vector.broadcast %cst_14 : f32 to vector<8x256xf32>
      %17 = arith.maximumf %15, %16 : vector<8x256xf32>
      %18 = arith.truncf %17 : vector<8x256xf32> to vector<8x256xbf16>
      %c0_15 = arith.constant 0 : index
      %c0_16 = arith.constant 0 : index
      %19 = vector.load %arg6[%c0_15, %c0_16] : memref<8x256xbf16, #tpu.memory_space<vmem>>, vector<8x256xbf16>
      tpu.vector_store %arg6[%c0_15, %c0_16], %18 {strides = array<i32>} : memref<8x256xbf16, #tpu.memory_space<vmem>>, vector<8x256xbf16>,
    } else {
    }
    return
  }
  func.func @transform_0(%arg0: i32, %arg1: i32, %arg2: i32) -> (i32, i32) {
    %c0_i32 = arith.constant 0 : i32
    return %arg0, %arg2 : i32, i32
  }
  func.func @transform_1(%arg0: i32, %arg1: i32, %arg2: i32) -> (i32, i32) {
    %c0_i32 = arith.constant 0 : i32
    return %arg2, %arg1 : i32, i32
  }
  func.func @transform_2(%arg0: i32, %arg1: i32, %arg2: i32) -> (i32, i32) {
    %c0_i32 = arith.constant 0 : i32
    %c0_i32_0 = arith.constant 0 : i32
    return %arg0, %c0_i32 : i32, i32
  }
  func.func @transform_3(%arg0: i32, %arg1: i32, %arg2: i32) -> (i32, i32) {
    %c0_i32 = arith.constant 0 : i32
    return %arg0, %arg1 : i32, i32
  }
}

module attributes {stable_mosaic.version = 11 : i64} {
  func.func @_pool_max_kernel(%arg0: i32, %arg1: memref<4x8x128xbf16, #tpu.memory_space<vmem>>, %arg2: memref<8x128xbf16, #tpu.memory_space<vmem>>) attributes {dimension_semantics = [#tpu.dimension_semantics<parallel>], iteration_bounds = array<i64: 1>, scalar_prefetch = 0 : i64, scratch_operands = 0 : i64, tpu.core_type = #tpu.core_type<tc>, window_params = [{transform_indices = @transform_0, window_bounds = array<i64: 4, 8, 128>}, {transform_indices = @transform_1, window_bounds = array<i64: 8, 128>}]} {
    %c0 = arith.constant 0 : index
    %c0_0 = arith.constant 0 : index
    %c0_1 = arith.constant 0 : index
    %0 = vector.load %arg1[%c0, %c0_0, %c0_1] : memref<4x8x128xbf16, #tpu.memory_space<vmem>>, vector<4x8x128xbf16>
    %cst = arith.constant dense<0xFF80> : vector<8x128xbf16>
    %1 = vector.multi_reduction <maximumf>, %0, %cst [0] : vector<4x8x128xbf16> to vector<8x128xbf16>
    %c0_2 = arith.constant 0 : index
    %c0_3 = arith.constant 0 : index
    %2 = vector.load %arg2[%c0_2, %c0_3] : memref<8x128xbf16, #tpu.memory_space<vmem>>, vector<8x128xbf16>
    tpu.vector_store %arg2[%c0_2, %c0_3], %1 {strides = array<i32>} : memref<8x128xbf16, #tpu.memory_space<vmem>>, vector<8x128xbf16>,
    return
  }
  func.func @transform_0(%arg0: i32) -> (i32, i32, i32) {
    %c0_i32 = arith.constant 0 : i32
    %c0_i32_0 = arith.constant 0 : i32
    %c0_i32_1 = arith.constant 0 : i32
    return %c0_i32, %arg0, %c0_i32_0 : i32, i32, i32
  }
  func.func @transform_1(%arg0: i32) -> (i32, i32) {
    %c0_i32 = arith.constant 0 : i32
    %c0_i32_0 = arith.constant 0 : i32
    return %arg0, %c0_i32 : i32, i32
  }
}

module attributes {stable_mosaic.version = 11 : i64} {
  func.func @_conv_gemm_kernel(%arg0: i32, %arg1: i32, %arg2: i32, %arg3: memref<16x72xbf16, #tpu.memory_space<vmem>>, %arg4: memref<72x128xbf16, #tpu.memory_space<vmem>>, %arg5: memref<16x1xf32, #tpu.memory_space<vmem>>, %arg6: memref<16x128xbf16, #tpu.memory_space<vmem>>, %arg7: memref<16x128xf32, #tpu.memory_space<vmem>>) attributes {dimension_semantics = [#tpu.dimension_semantics<parallel>, #tpu.dimension_semantics<parallel>, #tpu.dimension_semantics<arbitrary>], iteration_bounds = array<i64: 1, 1, 1>, scalar_prefetch = 0 : i64, scratch_operands = 1 : i64, tpu.core_type = #tpu.core_type<tc>, window_params = [{transform_indices = @transform_0, window_bounds = array<i64: 16, 72>}, {transform_indices = @transform_1, window_bounds = array<i64: 72, 128>}, {transform_indices = @transform_2, window_bounds = array<i64: 16, 1>}, {transform_indices = @transform_3, window_bounds = array<i64: 16, 128>}]} {
    %c0_i32 = arith.constant 0 : i32
    %0 = arith.cmpi eq, %arg2, %c0_i32 : i32
    %1 = arith.extui %0 : i1 to i32
    %c0_i32_0 = arith.constant 0 : i32
    %2 = arith.cmpi ne, %1, %c0_i32_0 : i32
    scf.if %2 {
      %cst_10 = arith.constant 0.000000e+00 : f32
      %12 = vector.broadcast %cst_10 : f32 to vector<16x128xf32>
      %c0_11 = arith.constant 0 : index
      %c0_12 = arith.constant 0 : index
      %13 = vector.load %arg7[%c0_11, %c0_12] : memref<16x128xf32, #tpu.memory_space<vmem>>, vector<16x128xf32>
      tpu.vector_store %arg7[%c0_11, %c0_12], %12 {strides = array<i32>} : memref<16x128xf32, #tpu.memory_space<vmem>>, vector<16x128xf32>,
    } else {
    }
    %c0 = arith.constant 0 : index
    %c0_1 = arith.constant 0 : index
    %3 = vector.load %arg7[%c0, %c0_1] : memref<16x128xf32, #tpu.memory_space<vmem>>, vector<16x128xf32>
    %c0_2 = arith.constant 0 : index
    %c0_3 = arith.constant 0 : index
    %4 = vector.load %arg3[%c0_2, %c0_3] : memref<16x72xbf16, #tpu.memory_space<vmem>>, vector<16x72xbf16>
    %c0_4 = arith.constant 0 : index
    %c0_5 = arith.constant 0 : index
    %5 = vector.load %arg4[%c0_4, %c0_5] : memref<72x128xbf16, #tpu.memory_space<vmem>>, vector<72x128xbf16>
    %cst = arith.constant dense<0.000000e+00> : vector<16x128xf32>
    %6 = tpu.matmul %4, %5, %cst {dimension_numbers = #tpu.dot_dimension_numbers<[1], [0], [0], [1], [0, 0, 1, 1], [], []>} : vector<16x72xbf16>, vector<72x128xbf16>, vector<16x128xf32> -> vector<16x128xf32>
    %7 = arith.addf %3, %6 : vector<16x128xf32>
    %c0_6 = arith.constant 0 : index
    %c0_7 = arith.constant 0 : index
    %8 = vector.load %arg7[%c0_6, %c0_7] : memref<16x128xf32, #tpu.memory_space<vmem>>, vector<16x128xf32>
    tpu.vector_store %arg7[%c0_6, %c0_7], %7 {strides = array<i32>} : memref<16x128xf32, #tpu.memory_space<vmem>>, vector<16x128xf32>,
    %c0_i32_8 = arith.constant 0 : i32
    %9 = arith.cmpi eq, %arg2, %c0_i32_8 : i32
    %10 = arith.extui %9 : i1 to i32
    %c0_i32_9 = arith.constant 0 : i32
    %11 = arith.cmpi ne, %10, %c0_i32_9 : i32
    scf.if %11 {
      %c0_10 = arith.constant 0 : index
      %c0_11 = arith.constant 0 : index
      %12 = vector.load %arg7[%c0_10, %c0_11] : memref<16x128xf32, #tpu.memory_space<vmem>>, vector<16x128xf32>
      %c0_12 = arith.constant 0 : index
      %c0_13 = arith.constant 0 : index
      %13 = vector.load %arg5[%c0_12, %c0_13] : memref<16x1xf32, #tpu.memory_space<vmem>>, vector<16x1xf32>
      %14 = vector.broadcast %13 : vector<16x1xf32> to vector<16x128xf32>
      %15 = arith.addf %12, %14 : vector<16x128xf32>
      %cst_14 = arith.constant 0.000000e+00 : f32
      %16 = vector.broadcast %cst_14 : f32 to vector<16x128xf32>
      %17 = arith.maximumf %15, %16 : vector<16x128xf32>
      %18 = arith.truncf %17 : vector<16x128xf32> to vector<16x128xbf16>
      %c0_15 = arith.constant 0 : index
      %c0_16 = arith.constant 0 : index
      %19 = vector.load %arg6[%c0_15, %c0_16] : memref<16x128xbf16, #tpu.memory_space<vmem>>, vector<16x128xbf16>
      tpu.vector_store %arg6[%c0_15, %c0_16], %18 {strides = array<i32>} : memref<16x128xbf16, #tpu.memory_space<vmem>>, vector<16x128xbf16>,
    } else {
    }
    return
  }
  func.func @transform_0(%arg0: i32, %arg1: i32, %arg2: i32) -> (i32, i32) {
    %c0_i32 = arith.constant 0 : i32
    return %arg0, %arg2 : i32, i32
  }
  func.func @transform_1(%arg0: i32, %arg1: i32, %arg2: i32) -> (i32, i32) {
    %c0_i32 = arith.constant 0 : i32
    return %arg2, %arg1 : i32, i32
  }
  func.func @transform_2(%arg0: i32, %arg1: i32, %arg2: i32) -> (i32, i32) {
    %c0_i32 = arith.constant 0 : i32
    %c0_i32_0 = arith.constant 0 : i32
    return %arg0, %c0_i32 : i32, i32
  }
  func.func @transform_3(%arg0: i32, %arg1: i32, %arg2: i32) -> (i32, i32) {
    %c0_i32 = arith.constant 0 : i32
    return %arg0, %arg1 : i32, i32
  }
}

module attributes {stable_mosaic.version = 11 : i64} {
  func.func @_mlp_fused_kernel(%arg0: memref<2x256xbf16, #tpu.memory_space<vmem>>, %arg1: memref<256x32xbf16, #tpu.memory_space<vmem>>, %arg2: memref<1x32xf32, #tpu.memory_space<vmem>>, %arg3: memref<32x4xbf16, #tpu.memory_space<vmem>>, %arg4: memref<1x4xf32, #tpu.memory_space<vmem>>, %arg5: memref<2x4xf32, #tpu.memory_space<vmem>>) attributes {dimension_semantics = [], scalar_prefetch = 0 : i64, scratch_operands = 0 : i64, tpu.core_type = #tpu.core_type<tc>} {
    %c0 = arith.constant 0 : index
    %c0_0 = arith.constant 0 : index
    %0 = vector.load %arg0[%c0, %c0_0] : memref<2x256xbf16, #tpu.memory_space<vmem>>, vector<2x256xbf16>
    %c0_1 = arith.constant 0 : index
    %c0_2 = arith.constant 0 : index
    %1 = vector.load %arg1[%c0_1, %c0_2] : memref<256x32xbf16, #tpu.memory_space<vmem>>, vector<256x32xbf16>
    %c0_3 = arith.constant 0 : index
    %c0_4 = arith.constant 0 : index
    %2 = vector.load %arg2[%c0_3, %c0_4] : memref<1x32xf32, #tpu.memory_space<vmem>>, vector<1x32xf32>
    %cst = arith.constant dense<0.000000e+00> : vector<2x32xf32>
    %3 = tpu.matmul %0, %1, %cst {dimension_numbers = #tpu.dot_dimension_numbers<[1], [0], [0], [1], [0, 0, 1, 1], [], []>} : vector<2x256xbf16>, vector<256x32xbf16>, vector<2x32xf32> -> vector<2x32xf32>
    %4 = vector.broadcast %2 : vector<1x32xf32> to vector<2x32xf32>
    %5 = arith.addf %3, %4 : vector<2x32xf32>
    %cst_5 = arith.constant 0.000000e+00 : f32
    %6 = vector.broadcast %cst_5 : f32 to vector<2x32xf32>
    %7 = arith.maximumf %5, %6 : vector<2x32xf32>
    %c0_6 = arith.constant 0 : index
    %c0_7 = arith.constant 0 : index
    %8 = vector.load %arg3[%c0_6, %c0_7] : memref<32x4xbf16, #tpu.memory_space<vmem>>, vector<32x4xbf16>
    %c0_8 = arith.constant 0 : index
    %c0_9 = arith.constant 0 : index
    %9 = vector.load %arg4[%c0_8, %c0_9] : memref<1x4xf32, #tpu.memory_space<vmem>>, vector<1x4xf32>
    %10 = arith.truncf %7 : vector<2x32xf32> to vector<2x32xbf16>
    %cst_10 = arith.constant dense<0.000000e+00> : vector<2x4xf32>
    %11 = tpu.matmul %10, %8, %cst_10 {dimension_numbers = #tpu.dot_dimension_numbers<[1], [0], [0], [1], [0, 0, 1, 1], [], []>} : vector<2x32xbf16>, vector<32x4xbf16>, vector<2x4xf32> -> vector<2x4xf32>
    %12 = vector.broadcast %9 : vector<1x4xf32> to vector<2x4xf32>
    %13 = arith.addf %11, %12 : vector<2x4xf32>
    %cst_11 = arith.constant 0.000000e+00 : f32
    %14 = vector.broadcast %cst_11 : f32 to vector<2x4xf32>
    %15 = arith.maximumf %13, %14 : vector<2x4xf32>
    %c0_12 = arith.constant 0 : index
    %c0_13 = arith.constant 0 : index
    %16 = vector.load %arg5[%c0_12, %c0_13] : memref<2x4xf32, #tpu.memory_space<vmem>>, vector<2x4xf32>
    tpu.vector_store %arg5[%c0_12, %c0_13], %15 {strides = array<i32>} : memref<2x4xf32, #tpu.memory_space<vmem>>, vector<2x4xf32>,
    return
  }
}

</mosaic_0001>

<bundles_post_ra>
// kernel: _lambda_.6
= control target key start
LH: loop header
LB: loop body
LE: loop exit
PB: predicated region body
PF: predicated region fallthrough
CT: control target
= control target key end

     0   :  { %vm13_vm0 = vcmask 1043456   ;;  %s60_s0 = inlined_call_operand.vmem [shape: bf16[4,8,128], index: 0, kind: input, shape index: {}]   ;;  %s61_s1 = inlined_call_operand.vmem [shape: bf16[8,128], index: 1, kind: output, shape index: {}]  }
   0x1   :  { %v9_v0 = vld [vmem:[%s60_s0] sm:$0xf]  ;;  %v10_v1 = vld [vmem:[%s60_s0 + $0x4] sm:$0xf]  ;;  %v11_v2 = vld [vmem:[%s60_s0 + $0x8] sm:$0xf] }
   0x2   :  { %v12_v3 = vld [vmem:[%s60_s0 + $0xc] sm:$0xf]  ;;  %v16_v4 = vsel %vm13_vm0, %v9_v0, 4286644096  ;;  %v19_v5 = vsel %vm13_vm0, %v10_v1, 4286644096 }
   0x3   :  { %v22_v6 = vsel %vm13_vm0, %v11_v2, 4286644096  ;;  %v25_v7 = vsel %vm13_vm0, %v12_v3, 4286644096  ;;  %v27_v8 = vmax.bf16 %v19_v5, %v16_v4 }
   0x4   :  { %v28_v9 = vmax.bf16 %v25_v7, %v22_v6 }
   0x6   :  { %v29_v10 = vmax.bf16 %v28_v9, %v27_v8 }
   0x8   :  { %30 = vst [vmem:[%s61_s1] sm:$0xf] %v29_v10 }

// kernel: _lambda_.5
= control target key start
LH: loop header
LB: loop body
LE: loop exit
PB: predicated region body
PF: predicated region fallthrough
CT: control target
= control target key end

     0   :  { %s688_s12 = smov 0   ;;  %s690_s13 = smov 0   ;;  %s759_s0 = inlined_call_operand.vmem [shape: bf16[8,36], index: 0, kind: input, shape index: {}]   ;;  %s760_s1 = inlined_call_operand.vmem [shape: bf16[36,512], index: 1, kind: input, shape index: {}]   ;;  %s761_s2 = inlined_call_operand.vmem [shape: f32[8,1], index: 2, kind: input, shape index: {}]   ;;  %s762_s3 = inlined_call_operand.vmem [shape: bf16[8,512], index: 3, kind: output, shape index: {}]  }
   0x1   :  { %s692_s14 = smov 0   ;;  %s694_s15 = smov 0  }
   0x2   :  { %s696_s16 = smov 0  }
   0x3 LB: > { %s28_s17 = sadd.s32 1, %s661_s15  ;;  %p76_p1 = scmp.ne.s32.totalorder %s653_s13, %s649_s12  ;;  %s665_s16 = sphi %s696_s16, %s13_s16   ;;  %s661_s15 = sphi %s694_s15, %s766_s15   ;;  %s657_s14 = sphi %s692_s14, %s765_s14   ;;  %s653_s13 = sphi %s690_s13, %s764_s13   ;;  %s649_s12 = sphi %s688_s12, %s763_s12  }
   0x4   : > { %p30_p0 = scmp.ge.s32.totalorder %s28_s17, 2  ;;  %p77_p2 = scmp.eq.s32.totalorder %s665_s16, 0 }
   0x5   : > { %s69_s19 = sadd.s32 1, %s653_s13  ;;  %p556_p5 = scmp.ge.s32.totalorder %s665_s16, 2 }
   0x6   : > { %s768_s17 = smov (%p30_p0, %s28_s17), 0  ;;  %p78_p3 = por %p77_p2, %p76_p1 }
   0x7   : > { %s65_s18 = ssub.s32 %s661_s15, %s768_s17  ;;  %173 = sbr.rel (%p556_p5) target bundleno = 19 (0x13), region = 24 }
   0x8   : > { %p67_p4 = scmp.eq.s32.totalorder %s65_s18, 0 }
   0xa   : > { %s723_s20 = scalar_select %p67_p4, %s653_s13, %s69_s19  }
   0xc   : > { %176 = sbr.rel (!%p78_p3) target bundleno = 19 (0x13), region = 28  ;;  %s178_s21 = sand.u32 (%p78_p3), 1, %s653_s13  }
   0xd   : > { %s573_s22 = sshll.u32 (%p78_p3), %s661_s15, 3  ;;  %s575_s23 = smul.u32 (%p78_p3), 40, %s178_s21 }
   0xe   : > { %s186_s26 = scalar_lea.vmem (%p78_p3), %s760_s1, %s573_s22 }
   0xf   : > { %v223_v0 = vld [vmem:[%s186_s26] sm:$0xff] (%p78_p3)  ;;  %v225_v1 = vld [vmem:[%s186_s26 + $0x10] sm:$0xff] (%p78_p3)  ;;  %s180_s27 = scalar_lea.vmem (%p78_p3), [#allocation3], %s575_s23 }
  0x10   : > { %v227_v2 = vld [vmem:[%s186_s26 + $0x20] sm:$0xff] (%p78_p3)  ;;  %v229_v3 = vld [vmem:[%s186_s26 + $0x30] sm:$0xff] (%p78_p3)  ;;  %224 = vst [vmem:[%s180_s27] sm:$0xff] (%p78_p3), %v223_v0  ;;  %226 = vst [vmem:[%s180_s27 + $0x8] sm:$0xff] (%p78_p3), %v225_v1 }
  0x11   : > { %v231_v4 = vld [vmem:[%s186_s26 + $0x40] sm:$0xff]  ;;  %228 = vst [vmem:[%s180_s27 + $0x10] sm:$0xff] %v227_v2  ;;  %230 = vst [vmem:[%s180_s27 + $0x18] sm:$0xff] %v229_v3 }
  0x12   : > { %232 = vst [vmem:[%s180_s27 + $0x20] sm:$0xff] %v231_v4 }
  0x13 PF: > { %p559_p6 = scmp.ge.s32.totalorder %s665_s16, 1  ;;  %p237_p7 = scmp.lt.s32.totalorder %s665_s16, 3 }
  0x15   : > { %p238_p8 = pnand %p559_p6, %p237_p7 }
  0x16   : > { %s244_s28 = sand.u32 (!%p238_p8), 1, %s649_s12   ;;  %s560_s8 = sshll.u32 (!%p238_p8), %s657_s14, 1 }
  0x17   : > { %241 = sbr.rel (%p238_p8) target bundleno = 246 (0xf6), region = 66  ;;  %p298_p9 = scmp.lt.s32.totalorder (!%p238_p8), %s560_s8, 3 }
  0x18   : > { %s576_s29 = smul.u32 (!%p238_p8), 40, %s244_s28 }
  0x1a   : > { %s246_s5 = scalar_lea.vmem (!%p238_p8), [#allocation3], %s576_s29 }
  0x1c   : > { %v667_v5 = vmov 0   ;;  %v406_v6 = vld [vmem:[%s761_s2] sm:$0xff]  ;;  %vm349_vm0 = vcmask 1041408   ;;  %vm345_vm1 = vcmask 293888   ;;  %s770_s8 = smov (!%p298_p9, %s560_s8), 3 }
  0x1d   : > { %388 = vmatprep.mubr.bf16.mxu0 %v667_v5  ;;  %618 = vset.pattern.permute.xlu0 %v667_v5  ;;  %v319_v7 = vld [vmem:[%s246_s5 + $0x20] sm:$0x33]  ;;  %v621_v10 = vld [vmem:[%s246_s5 + $0x14] ss:$8 sps:$4 sm:$0xff]   ;;  %v623_v12 = vld [vmem:[%s246_s5 + $0x10] ss:$8 sps:$4 sm:$0xff]  }
  0x1e   : > { %409 = vperm.xlu0 %618, %v406_v6   ;;  %v567_v8 = vcombine.high %v319_v7, %v319_v7  ;;  %v566_v9 = vcombine.low %v319_v7, %v319_v7  ;;  %v624_v13 = vld [vmem:[%s246_s5 + $0x4] ss:$8 sps:$4 sm:$0xff]   ;;  %v626_v14 = vld [vmem:[%s246_s5] ss:$8 sps:$4 sm:$0xff]   ;;  %s561_s9 = sshll.u32 %s770_s8, 2 }
  0x1f   : > { %v314_v15 = vld [vmem:[%s759_s0] sm:$0xf]  ;;  %s303_s12 = scalar_lea.vmem %s762_s3, %s561_s9 }
  0x20   : > { %568 = vmatprep.subr.msk.bf16.mxu0 %vm349_vm0, %v567_v8  ;;  %v351_v11 = vsel %vm349_vm0, %v566_v9, 0 }
  0x21   : > { %367 = vmatpush1.bf16.msra.mxu0 %v351_v11 }
  0x22   : > { %368 = vmatprep.subr.bf16.mxu0 %v621_v10 }
  0x25   : > { %369 = vmatpush1.bf16.msra.mxu0 %v623_v12 }
  0x26   : > { %370 = vmatprep.subr.bf16.mxu0 %v624_v13 }
  0x29   : > { %371 = vmatpush1.bf16.msra.mxu0 %v626_v14 }
  0x2c   : > { %569 = vmatmul.mubr.msk.bf16.vlgmr.msra.gmra.mxu0 %vm345_vm1, %v314_v15 }
  0x99   : > { %v410_v16 = vpop.permute.xlu0 %409 }
  0xec   : > { %v390_v17 = vpop.f32.mrf.mxu0 }
  0xed   : > { %v412_v18 = vadd.f32 %v410_v16, %v390_v17 }
  0xee   : > { %v392_v19 = vpop.f32.mrf.mxu0 }
  0xef   : > { %v413_v20 = vadd.f32 %v410_v16, %v392_v19  ;;  %v414_v22 = vmax.f32 %v412_v18, 0.0 }
  0xf0   : > { %v394_v21 = vpop.f32.mrf.mxu0 }
  0xf1   : > { %v415_v23 = vmax.f32 %v413_v20, 0.0 }
  0xf2   : > { %v395_v24 = vpop.f32.mrf.mxu0 }
  0xf3   : > { %v574_v25 = vpack.c.bf16 %v415_v23, %v414_v22 }
  0xf5   : > { %424 = vst [vmem:[%s303_s12] sm:$0xff] %v574_v25 }
  0xf6 PF: > { %s13_s16 = sadd.s32 1, %s665_s16   ;;  %s763_s12 = smov %s653_s13 }
  0xf7   : > { %p10_p10 = scmp.ge.s32.totalorder %s13_s16, 4   ;;  %s764_s13 = smov %s723_s20 }
  0xf8   : > { %s765_s14 = smov %s661_s15  ;;  %s766_s15 = smov %s768_s17 }
  0xf9   :  { %12 = sbr.rel (!%p10_p10) target bundleno = 3 (0x3), region = 119 }

// kernel: _lambda_.7
= control target key start
LH: loop header
LB: loop body
LE: loop exit
PB: predicated region body
PF: predicated region fallthrough
CT: control target
= control target key end

     0   :  { %vm70_vm0 = vcmask 1043456   ;;  %v200_v0 = vmov 0.0   ;;  %vm201_vm1 = vmmov 0   ;;  %v202_v3 = vmov 0   ;;  %s250_s1 = inlined_call_operand.vmem [shape: bf16[72,128], index: 1, kind: input, shape index: {}]   ;;  %s251_s2 = inlined_call_operand.vmem [shape: f32[16,1], index: 2, kind: input, shape index: {}]   ;;  %s252_s0 = inlined_call_operand.vmem [shape: bf16[16,72], index: 0, kind: input, shape index: {}]   ;;  %s253_s3 = inlined_call_operand.vmem [shape: bf16[16,128], index: 3, kind: output, shape index: {}]  }
   0x1   :  { %176 = vmatprep.subr.bf16.mxu0 %v200_v0  ;;  %v194_v1 = vld [vmem:[%s250_s1 + $0x20] ss:$0 sps:$4 sm:$0xff]   ;;  %186 = vmatprep.mubr.msk.bf16.mxu0 %vm201_vm1, %v200_v0  ;;  %v195_v4 = vld [vmem:[%s250_s1 + $0x18] sm:$0xff]   ;;  %v196_v6 = vld [vmem:[%s250_s1 + $0x10] sm:$0xff]   ;;  %vm66_vm2 = vcmask 588800  }
   0x2   :  { %v72_v2 = vsel %vm70_vm0, %v194_v1, 0  ;;  %193 = vset.pattern.permute.xlu0 %v202_v3  ;;  %v124_v5 = vld [vmem:[%s251_s2] sm:$0xff]  ;;  %v125_v7 = vld [vmem:[%s251_s2 + $0x8] sm:$0xff] }
   0x3   :  { %177 = vmatpush3.bf16.msra.mxu0 %v72_v2  ;;  %128 = vperm.xlu0 %193, %v124_v5   ;;  %v197_v8 = vld [vmem:[%s250_s1 + $0x8] sm:$0xff]   ;;  %v198_v9 = vld [vmem:[%s250_s1] sm:$0xff]  }
   0x4   :  { %178 = vmatprep.subr.bf16.mxu0 %v200_v0  ;;  %v199_v10 = vld [vmem:[%s252_s0] sm:$0xff]  }
   0x7   :  { %179 = vmatpush3.bf16.msra.mxu0 %v195_v4  ;;  %133 = vperm.xlu0 %193, %v125_v7  }
   0x8   :  { %180 = vmatprep.subr.bf16.mxu0 %v200_v0 }
   0xb   :  { %181 = vmatpush3.bf16.msra.mxu0 %v196_v6 }
   0xc   :  { %182 = vmatprep.subr.bf16.mxu0 %v200_v0 }
   0xf   :  { %183 = vmatpush3.bf16.msra.mxu0 %v197_v8 }
  0x10   :  { %184 = vmatprep.subr.bf16.mxu0 %v200_v0 }
  0x13   :  { %185 = vmatpush3.bf16.msra.mxu0 %v198_v9 }
  0x16   :  { %187 = vmatmul.mubr.msk.bf16.vlgmr.msra.gmra.mxu0 %vm66_vm2, %v199_v10 }
  0x7e   :  { %v129_v11 = vpop.permute.xlu0 %128 }
  0x82   :  { %v134_v15 = vpop.permute.xlu0 %133 }
  0xd6   :  { %v108_v12 = vpop.f32.mrf.mxu0 }
  0xd7   :  { %v136_v14 = vadd.f32 %v129_v11, %v108_v12 }
  0xd8   :  { %v188_v13 = vpop.f32.mrf.mxu0 }
  0xd9   :  { %v138_v19 = vmax.f32 %v136_v14, 0.0 }
  0xda   :  { %v111_v16 = vpop.f32.mrf.mxu0 }
  0xdb   :  { %v137_v17 = vadd.f32 %v134_v15, %v111_v16 }
  0xdc   :  { %v189_v18 = vpop.f32.mrf.mxu0 }
  0xdd   :  { %v139_v20 = vmax.f32 %v137_v17, 0.0 }
  0xdf   :  { %v168_v21 = vpack.c.bf16 %v139_v20, %v138_v19 }
  0xe1   :  { %169 = vst [vmem:[%s253_s3] sm:$0xff] %v168_v21  }

// kernel: _lambda_.9
= control target key start
LH: loop header
LB: loop body
LE: loop exit
PB: predicated region body
PF: predicated region fallthrough
CT: control target
= control target key end

     0   :  { %v74_v8 = vlaneseq  ;;  %v408_v14 = vmov 1966171168   ;;  %s508_s0 = inlined_call_operand.vmem [shape: bf16[2,256], index: 0, kind: input, shape index: {}]   ;;  %s509_s1 = inlined_call_operand.vmem [shape: bf16[256,32], index: 1, kind: input, shape index: {}]   ;;  %s510_s2 = inlined_call_operand.vmem [shape: f32[1,32], index: 2, kind: input, shape index: {}]   ;;  %s511_s3 = inlined_call_operand.vmem [shape: bf16[32,4], index: 3, kind: input, shape index: {}]   ;;  %s512_s4 = inlined_call_operand.vmem [shape: f32[1,4], index: 4, kind: input, shape index: {}]   ;;  %s513_s5 = inlined_call_operand.hbm [shape: f32[2,4], index: 5, kind: output, shape index: {}]  }
   0x1   :  { %v368_v0 = vld [vmem:[%s509_s1 + $0x78] sm:$0xff]   ;;  %v370_v2 = vld [vmem:[%s509_s1 + $0x70] sm:$0xff]   ;;  %v372_v4 = vld [vmem:[%s509_s1 + $0x68] sm:$0xff]   ;;  %v72_v15 = vunpack.c.l.s4 %v408_v14 }
   0x2   :  { %v369_v1 = vld [vmem:[%s509_s1 + $0x38] sm:$0xff]   ;;  %331 = vmatprep.subr.bf16.mxu0 %v368_v0  ;;  %v371_v3 = vld [vmem:[%s509_s1 + $0x30] sm:$0xff]   ;;  %v373_v5 = vld [vmem:[%s509_s1 + $0x28] sm:$0xff]   ;;  %v75_v12 = vshrl.u32 %v74_v8, 7 }
   0x3   :  { %332 = vmatpush3.bf16.msra.mxu0 %v369_v1  ;;  %v374_v6 = vld [vmem:[%s509_s1 + $0x60] sm:$0xff]   ;;  %v376_v9 = vld [vmem:[%s509_s1 + $0x58] sm:$0xff]   ;;  %v378_v11 = vld [vmem:[%s509_s1 + $0x50] sm:$0xff]  }
   0x4   :  { %333 = vmatprep.subr.bf16.mxu0 %v370_v2  ;;  %v375_v7 = vld [vmem:[%s509_s1 + $0x20] sm:$0xff]   ;;  %v377_v10 = vld [vmem:[%s509_s1 + $0x18] sm:$0xff]  }
   0x5   :  { %v310_v13 = vld.sshfl [vmem:[%s508_s0] sm:$0x11 pattern:$0x75316420] }
   0x7   :  { %334 = vmatpush3.bf16.msra.mxu0 %v371_v3 }
   0x8   :  { %335 = vmatprep.subr.bf16.mxu0 %v372_v4 }
   0xb   :  { %336 = vmatpush3.bf16.msra.mxu0 %v373_v5 }
   0xc   :  { %337 = vmatprep.subr.bf16.mxu0 %v374_v6 }
   0xf   :  { %338 = vmatpush3.bf16.msra.mxu0 %v375_v7 }
  0x10   :  { %339 = vmatprep.subr.bf16.mxu0 %v376_v9 }
  0x11   :  { %10 = vsyncpa [#allocation3], 0  ;;  %v379_v16 = vld [vmem:[%s509_s1 + $0x10] sm:$0xff]   ;;  %v70_v17 = vcombine.high %v310_v13, %v310_v13  ;;  %v73_v18 = vunpack.c.0.s8 %v72_v15  ;;  %v380_v19 = vld [vmem:[%s509_s1 + $0x48] sm:$0xff]   ;;  %v409_v27 = vmov 0.0   ;;  %vm410_vm0 = vmmov 0  }
  0x12   :  { %v381_v21 = vld [vmem:[%s509_s1 + $0x8] sm:$0xff]   ;;  %v382_v23 = vld [vmem:[%s509_s1 + $0x40] sm:$0xff]   ;;  %356 = vmatprep.subr.bf16.mxu1 %v409_v27  ;;  %360 = vmatprep.mubr.msk.bf16.mxu1 %vm410_vm0, %v409_v27  ;;  %vm248_vm1 = vcmask 261120   ;;  %vm293_vm2 = vcmask 25600  }
  0x13   :  { %340 = vmatpush3.bf16.msra.mxu0 %v377_v10  ;;  %v76_v20 = vsub.s32 %v73_v18, %v75_v12  ;;  %v383_v24 = vld [vmem:[%s509_s1] sm:$0xff]   ;;  %v384_v26 = vld [vmem:[%s511_s3 + $0x8] sm:$0xff]  }
  0x14   :  { %341 = vmatprep.subr.bf16.mxu0 %v378_v11  ;;  %357 = vmatpush3.bf16.msra.mxu1 %v384_v26  ;;  %v385_v28 = vld [vmem:[%s511_s3] sm:$0xff]   ;;  %s411_s3 = smov [#allocation2]  }
  0x15   :  { %v84_v22 = vrot.slane %v70_v17, %v76_v20  ;;  %v77_v25 = vrot.slane %v310_v13, %v76_v20  ;;  %358 = vmatprep.subr.bf16.mxu1 %v409_v27  ;;  %v309_v30 = vld [vmem:[%s510_s2] ss:$0 sm:$0xff]  ;;  %s301_s8 = sshll.u32 %s411_s3, 4  ;;  %s302_s8 = int_to_ptr.vmem [resolvable:$true] %s301_s8 }
  0x16   :  { %v327_v38 = vld [vmem:[%s512_s4] ss:$0 sm:$0xff]  ;;  %s386_s2 = scalar_lea.vmem %s302_s8, 32  ;;  %p391_p1 = scmp.lt.s32.totalorder %s302_s8, %s302_s8 }
  0x17   :  { %342 = vmatpush3.bf16.msra.mxu0 %v379_v16  ;;  %215 = vmatprep.mubr.bf16.mxu0 %v84_v22  ;;  %p387_p0 = scmp.ne.s32.totalorder %s302_s8, %s386_s2  ;;  %p392_p2 = scmp.lt.s32.totalorder %s386_s2, %s386_s2 }
  0x18   :  { %343 = vmatprep.subr.bf16.mxu0 %v380_v19  ;;  %359 = vmatpush3.bf16.msra.mxu1 %v385_v28 }
  0x19   :  { %p393_p3 = por %p392_p2, %p391_p1 }
  0x1b   :  { %344 = vmatpush3.bf16.msra.mxu0 %v381_v21  ;;  %p394_p4 = pnand %p393_p3, %p387_p0 }
  0x1c   :  { %345 = vmatprep.subr.bf16.mxu0 %v382_v23 }
  0x1f   :  { %346 = vmatpush3.bf16.msra.mxu0 %v383_v24 }
  0x22   :  { %216 = vmatmul.mubr.bf16.vlgmr.msra.gmra.mxu0 %v77_v25 }
  0xe2   :  { %v347_v29 = vpop.f32.mrf.mxu0 }
  0xe4   :  { %v348_v31 = vpop.f32.mrf.mxu0 }
  0xe5   :  { %v349_v32 = vadd.f32 %v348_v31, %v347_v29 }
  0xe6   :  { %v350_v33 = vpop.f32.mrf.mxu0 }
  0xe7   :  { %v218_v34 = vadd.f32 %v349_v32, %v309_v30 }
  0xe8   :  { %v351_v35 = vpop.f32.mrf.mxu0 }
  0xe9   :  { %v223_v36 = vmax.f32 %v218_v34, 0.0 }
  0xeb   :  { %v229_v37 = vpack.c.bf16 %v223_v36, %v223_v36 }
  0xed   :  { %361 = vmatmul.mubr.msk.bf16.vlgmr.msra.gmra.mxu1 %vm248_vm1, %v229_v37 }
 0x1ad   :  { %v286_v39 = vpop.f32.mrf.mxu1 }
 0x1ae   :  { %v287_v40 = vadd.f32 %v327_v38, %v286_v39 }
 0x1af   :  { %v362_v41 = vpop.f32.mrf.mxu1 }
 0x1b0   :  { %v292_v42 = vmax.f32 %v287_v40, 0.0 }
 0x1b1   :  { %v289_v43 = vpop.f32.mrf.mxu1 }
 0x1b2   :  { %294 = vst.msk [vmem:[#allocation2] sm:$0x3] %vm293_vm2, %v292_v42 }
 0x1b3   :  { %v363_v44 = vpop.f32.mrf.mxu1 }
 0x1b4   :  { %397 = shalt.err (!%p394_p4)
}
 0x1b5   :  { %304 = dma.vmem_to_hbm [thread:$0]  %s302_s8, 32, %s513_s5, [#allocation3]  }
 0x1b6   :  { %406 = dma.done.wait [#allocation3], 32  }
 0x1b7   :  { %407 = vsyncadd [#allocation3], 4294967264 }
 0x1b8   :  { %308 = vsyncpa [#allocation3], 1 }

</bundles_post_ra>
